<compile_context>
chip_gen: v7x
topology: tpu7x:2x2x1
jax: 0.10.0
libtpu: 0.0.40
codegen_flags: <defaults>
</compile_context>

<pallas_src>
import functools
import math

import jax
import jax.numpy as jnp
from jax.experimental import pallas as pl
from jax.experimental.pallas import tpu as pltpu


# ------------------------------ Pallas kernels ------------------------------

def _conv_stats_kernel(p_ref, w_ref, b_ref, a1_ref, y_ref, part_ref, *,
                       pre_prelu, m_true, tm):
    """Pass A: conv matmul (+bias, optional PReLU) and per-tile BN partial sums."""
    i = pl.program_id(0)

    y = jnp.dot(p_ref[...], w_ref[...], preferred_element_type=jnp.float32)
    y = y + b_ref[...]
    if pre_prelu:
        a1 = a1_ref[0]                              # PReLU inside the conv1 Sequential
        y = jnp.where(y >= 0, y, a1 * y)

    y_ref[...] = y

    # mask rows that are only M-padding so they do not pollute the batch statistics
    row = i * tm + jax.lax.broadcasted_iota(jnp.int32, y.shape, 0)
    ym = jnp.where(row < m_true, y, 0.0)
    s = jnp.sum(ym, axis=0, keepdims=True)          # (1, Cp)
    ss = jnp.sum(ym * ym, axis=0, keepdims=True)    # (1, Cp)
    part_ref[...] = jnp.concatenate([s, ss], axis=0).reshape(1, 2, -1)


def _bn_skip_prelu_kernel(*refs, skip_mode, m_inv, eps):
    """Pass B: BatchNorm apply + residual skip (identity / fused 1x1x1 proj) + PReLU."""
    if skip_mode == "proj":
        y_ref, st_ref, g_ref, be_ref, ap_ref, xs_ref, w3_ref, b3_ref, o_ref = refs
    elif skip_mode == "identity":
        y_ref, st_ref, g_ref, be_ref, ap_ref, sk_ref, o_ref = refs
    else:  # "none"
        y_ref, st_ref, g_ref, be_ref, ap_ref, o_ref = refs

    y = y_ref[...]
    mean = st_ref[0:1, :] * m_inv
    var = jnp.maximum(st_ref[1:2, :] * m_inv - mean * mean, 0.0)
    inv = jax.lax.rsqrt(var + eps)
    scale = g_ref[...] * inv
    shift = be_ref[...] - mean * scale
    out = y * scale + shift

    if skip_mode == "proj":                          # fused 1x1x1 projection skip
        out = out + (jnp.dot(xs_ref[...], w3_ref[...],
                             preferred_element_type=jnp.float32) + b3_ref[...])
    elif skip_mode == "identity":
        out = out + sk_ref[...]

    ap = ap_ref[0]                                   # shared self.p_relu slope
    out = jnp.where(out >= 0, out, ap * out)
    o_ref[...] = out.astype(o_ref.dtype)


# ------------------------------ pallas_call wrappers ------------------------------

_SMEM_SPEC = pl.BlockSpec(memory_space=pltpu.MemorySpace.SMEM)


def conv_bias_prelu_stats(patches, w, b, a1, *, pre_prelu, m_true, tm):
    Mp, Kp = patches.shape
    Cp = w.shape[1]
    n_tiles = Mp // tm
    kern = functools.partial(_conv_stats_kernel, pre_prelu=pre_prelu,
                             m_true=m_true, tm=tm)
    y, parts = pl.pallas_call(
        kern,
        out_shape=(jax.ShapeDtypeStruct((Mp, Cp), jnp.float32),
                   jax.ShapeDtypeStruct((n_tiles, 2, Cp), jnp.float32)),
        grid=(n_tiles,),
        in_specs=[
            pl.BlockSpec((tm, Kp), lambda i: (i, 0)),      # patch tile
            pl.BlockSpec((Kp, Cp), lambda i: (0, 0)),      # weights (untiled)
            pl.BlockSpec((1, Cp), lambda i: (0, 0)),       # bias
            _SMEM_SPEC,                                    # PReLU slope (scalar, SMEM)
        ],
        out_specs=(pl.BlockSpec((tm, Cp), lambda i: (i, 0)),
                   pl.BlockSpec((1, 2, Cp), lambda i: (i, 0, 0))),
        compiler_params=pltpu.CompilerParams(dimension_semantics=("parallel",)),
    )(patches, w, b, a1)
    stats = jnp.sum(parts, axis=0)                         # (2, Cp): [sum, sum_sq]
    return y, stats


def bn_skip_prelu(y, stats, gamma, beta, ap, *, skip_mode, m_true, tm, eps=1e-5,
                  skip=None, xs=None, w3=None, b3=None):
    Mp, Cp = y.shape
    n_tiles = Mp // tm
    kern = functools.partial(_bn_skip_prelu_kernel, skip_mode=skip_mode,
                             m_inv=1.0 / float(m_true), eps=eps)
    in_specs = [
        pl.BlockSpec((tm, Cp), lambda i: (i, 0)),          # conv activation tile
        pl.BlockSpec((2, Cp), lambda i: (0, 0)),           # channel stats
        pl.BlockSpec((1, Cp), lambda i: (0, 0)),           # gamma
        pl.BlockSpec((1, Cp), lambda i: (0, 0)),           # beta
        _SMEM_SPEC,                                        # PReLU slope
    ]
    args = [y, stats, gamma, beta, ap]
    if skip_mode == "proj":
        Kc = xs.shape[1]
        in_specs += [pl.BlockSpec((tm, Kc), lambda i: (i, 0)),
                     pl.BlockSpec((Kc, Cp), lambda i: (0, 0)),
                     pl.BlockSpec((1, Cp), lambda i: (0, 0))]
        args += [xs, w3, b3]
    elif skip_mode == "identity":
        in_specs += [pl.BlockSpec((tm, Cp), lambda i: (i, 0))]
        args += [skip]
    return pl.pallas_call(
        kern,
        out_shape=jax.ShapeDtypeStruct((Mp, Cp), jnp.float32),
        grid=(n_tiles,),
        in_specs=in_specs,
        out_specs=pl.BlockSpec((tm, Cp), lambda i: (i, 0)),
        compiler_params=pltpu.CompilerParams(dimension_semantics=("parallel",)),
    )(*args)


# ------------------------------ glue (plain JAX) ------------------------------

def _round_up(n, m):
    return (n + m - 1) // m * m


def _pad2(x, rows, cols):
    r, c = x.shape
    if r == rows and c == cols:
        return x
    return jnp.pad(x, ((0, rows - r), (0, cols - c)))


def _im2col3d(x, k, pad, stride):
    """x: (N, C, D, H, W) -> patches (N*OD*OH*OW, C*k^3); column order = (c, kd, kh, kw)."""
    N, C, D, H, W = x.shape
    xp = jnp.pad(x, ((0, 0), (0, 0), (pad, pad), (pad, pad), (pad, pad)))
    OD = (D + 2 * pad - k) // stride + 1
    OH = (H + 2 * pad - k) // stride + 1
    OW = (W + 2 * pad - k) // stride + 1
    cols = []
    for kd in range(k):
        for kh in range(k):
            for kw in range(k):
                cols.append(xp[:, :,
                               kd:kd + stride * (OD - 1) + 1:stride,
                               kh:kh + stride * (OH - 1) + 1:stride,
                               kw:kw + stride * (OW - 1) + 1:stride])
    p = jnp.stack(cols, axis=2)                     # (N, C, k^3, OD, OH, OW)
    p = p.reshape(N, C * k ** 3, OD * OH * OW)
    p = p.transpose(0, 2, 1).reshape(N * OD * OH * OW, C * k ** 3)
    return p, (OD, OH, OW)


def init_params(key, in_channels, out_channels, kernel_size, use_1x1conv):
    k = kernel_size
    ks = jax.random.split(key, 6)
    lim1 = 1.0 / math.sqrt(in_channels * k ** 3)
    lim2 = 1.0 / math.sqrt(out_channels * k ** 3)
    params = dict(
        w1=jax.random.uniform(ks[0], (out_channels, in_channels, k, k, k), jnp.float32, -lim1, lim1),
        b1=jax.random.uniform(ks[1], (out_channels,), jnp.float32, -lim1, lim1),
        w2=jax.random.uniform(ks[2], (out_channels, out_channels, k, k, k), jnp.float32, -lim2, lim2),
        b2=jax.random.uniform(ks[3], (out_channels,), jnp.float32, -lim2, lim2),
        a1=jnp.full((1,), 0.25, jnp.float32),       # PReLU inside conv1 (num_parameters=1)
        ap=jnp.full((1,), 0.25, jnp.float32),       # shared self.p_relu
        gamma1=jnp.ones((out_channels,), jnp.float32),
        beta1=jnp.zeros((out_channels,), jnp.float32),
        gamma2=jnp.ones((out_channels,), jnp.float32),
        beta2=jnp.zeros((out_channels,), jnp.float32),
    )
    if use_1x1conv:
        lim3 = 1.0 / math.sqrt(in_channels)
        params["w3"] = jax.random.uniform(ks[4], (out_channels, in_channels, 1, 1, 1),
                                          jnp.float32, -lim3, lim3)
        params["b3"] = jax.random.uniform(ks[5], (out_channels,), jnp.float32, -lim3, lim3)
    return params


def residual_forward(x, params, *, kernel_size, padding, stride, use_1x1conv, tm=256):
    """x: (N, Cin, D, H, W) NCDHW -> (N, Cout, OD, OH, OW) NCDHW (training-mode BN)."""
    N, Cin, D, H, W = x.shape
    k = kernel_size
    Cout = params["w1"].shape[0]
    Cp = _round_up(Cout, 128)
    a1, ap = params["a1"], params["ap"]

    # --- stage 1: Y = p_relu(bn1(conv1(X)))  [conv1 = Conv3d + PReLU] ---
    p1, (OD1, OH1, OW1) = _im2col3d(x, k, padding, stride)
    M1, K1 = p1.shape
    K1p, M1p = _round_up(K1, 128), _round_up(M1, tm)
    p1p = _pad2(p1, M1p, K1p).astype(jnp.bfloat16)
    w1 = _pad2(params["w1"].reshape(Cout, -1).T, K1p, Cp).astype(jnp.bfloat16)
    b1 = _pad2(params["b1"].reshape(1, Cout), 1, Cp)
    g1 = _pad2(params["gamma1"].reshape(1, Cout), 1, Cp)
    be1 = _pad2(params["beta1"].reshape(1, Cout), 1, Cp)

    y1, st1 = conv_bias_prelu_stats(p1p, w1, b1, a1, pre_prelu=True, m_true=M1, tm=tm)
    z1 = bn_skip_prelu(y1, st1, g1, be1, ap, skip_mode="none", m_true=M1, tm=tm)
    z1 = z1[:M1, :Cout]
    y1_vol = z1.reshape(N, OD1, OH1, OW1, Cout).transpose(0, 4, 1, 2, 3)

    # --- stage 2: Y = bn2(conv2(Y)); skip; p_relu(Y + X) ---
    p2, (OD2, OH2, OW2) = _im2col3d(y1_vol, k, padding, stride)
    M2, K2 = p2.shape
    K2p, M2p = _round_up(K2, 128), _round_up(M2, tm)
    p2p = _pad2(p2, M2p, K2p).astype(jnp.bfloat16)
    w2 = _pad2(params["w2"].reshape(Cout, -1).T, K2p, Cp).astype(jnp.bfloat16)
    b2 = _pad2(params["b2"].reshape(1, Cout), 1, Cp)
    g2 = _pad2(params["gamma2"].reshape(1, Cout), 1, Cp)
    be2 = _pad2(params["beta2"].reshape(1, Cout), 1, Cp)

    y2, st2 = conv_bias_prelu_stats(p2p, w2, b2, a1, pre_prelu=False, m_true=M2, tm=tm)

    if use_1x1conv:
        # 1x1x1 projection skip, fused into pass B (same M tiling, bf16 MXU matmul)
        xs = x[:, :, ::stride, ::stride, ::stride]
        xs_mat = xs.transpose(0, 2, 3, 4, 1).reshape(-1, Cin)
        Cin_p = _round_up(Cin, 128)
        xs_p = _pad2(xs_mat, M2p, Cin_p).astype(jnp.bfloat16)
        w3 = _pad2(params["w3"].reshape(Cout, Cin).T, Cin_p, Cp).astype(jnp.bfloat16)
        b3 = _pad2(params["b3"].reshape(1, Cout), 1, Cp)
        out = bn_skip_prelu(y2, st2, g2, be2, ap, skip_mode="proj", m_true=M2, tm=tm,
                            xs=xs_p, w3=w3, b3=b3)
    else:
        # identity skip (requires Cin == Cout and matching spatial dims, as in PyTorch)
        skip_mat = x.transpose(0, 2, 3, 4, 1).reshape(-1, Cin).astype(jnp.float32)
        out = bn_skip_prelu(y2, st2, g2, be2, ap, skip_mode="identity", m_true=M2, tm=tm,
                            skip=_pad2(skip_mat, M2p, Cp))

    out = out[:M2, :Cout]
    return out.reshape(N, OD2, OH2, OW2, Cout).transpose(0, 4, 1, 2, 3)


# ------------------------------ pure-JAX reference ------------------------------

def ref_forward(x, params, *, kernel_size, padding, stride, use_1x1conv, eps=1e-5):
    dn = ("NCDHW", "OIDHW", "NCDHW")

    def conv(inp, w, b, s, p):
        y = jax.lax.conv_general_dilated(inp, w, (s, s, s), [(p, p)] * 3,
                                         dimension_numbers=dn)
        return y + b.reshape(1, -1, 1, 1, 1)

    def prelu(v, a):
        return jnp.where(v >= 0, v, a * v)

    def bn(v, gamma, beta):
        mean = jnp.mean(v, axis=(0, 2, 3, 4), keepdims=True)
        var = jnp.mean((v - mean) ** 2, axis=(0, 2, 3, 4), keepdims=True)
        vhat = (v - mean) / jnp.sqrt(var + eps)
        return vhat * gamma.reshape(1, -1, 1, 1, 1) + beta.reshape(1, -1, 1, 1, 1)

    a1 = params["a1"][0]
    ap = params["ap"][0]
    y = prelu(conv(x, params["w1"], params["b1"], stride, padding), a1)
    y = prelu(bn(y, params["gamma1"], params["beta1"]), ap)
    y = bn(conv(y, params["w2"], params["b2"], stride, padding),
           params["gamma2"], params["beta2"])
    if use_1x1conv:
        x = conv(x, params["w3"], params["b3"], stride, 0)
    return prelu(y + x, ap)


# ------------------------------ demo ------------------------------

if __name__ == "__main__":
    key = jax.random.PRNGKey(0)
    kx, kp1, kp2 = jax.random.split(key, 3)

    N, Cin, D, H, W = 2, 4, 8, 8, 8
    k, pad, stride = 3, 1, 1
    x = jax.random.normal(kx, (N, Cin, D, H, W), jnp.float32)

    # config 1: identity skip (in_channels == out_channels, use_1x1conv=False)
    params = init_params(kp1, Cin, 4, k, use_1x1conv=False)
    out = residual_forward(x, params, kernel_size=k, padding=pad,
                           stride=stride, use_1x1conv=False)
    out = jax.block_until_ready(out)
    ref = ref_forward(x, params, kernel_size=k, padding=pad,
                      stride=stride, use_1x1conv=False)
    assert out.shape == (N, 4, D, H, W), out.shape
    err = float(jnp.max(jnp.abs(out - ref)))
    assert err < 5e-2, f"mismatch (identity skip): {err}"

    # config 2: 1x1x1 projection skip (channel change), exercises the fused proj path
    params2 = init_params(kp2, Cin, 8, k, use_1x1conv=True)
    out2 = residual_forward(x, params2, kernel_size=k, padding=pad,
                            stride=stride, use_1x1conv=True)
    out2 = jax.block_until_ready(out2)
    ref2 = ref_forward(x, params2, kernel_size=k, padding=pad,
                       stride=stride, use_1x1conv=True)
    assert out2.shape == (N, 8, D, H, W), out2.shape
    err2 = float(jnp.max(jnp.abs(out2 - ref2)))
    assert err2 < 5e-2, f"mismatch (1x1conv skip): {err2}"

    print("KERNEL_OK")
</pallas_src>

<mosaic_0001>
module attributes {stable_mosaic.version = 11 : i64} {
  func.func @_conv_stats_kernel(%arg0: i32, %arg1: memref<256x128xbf16, #tpu.memory_space<vmem>>, %arg2: memref<128x128xbf16, #tpu.memory_space<vmem>>, %arg3: memref<1x128xf32, #tpu.memory_space<vmem>>, %arg4: memref<1xf32, #tpu.memory_space<smem>>, %arg5: memref<256x128xf32, #tpu.memory_space<vmem>>, %arg6: memref<1x2x128xf32, #tpu.memory_space<vmem>>) attributes {dimension_semantics = [#tpu.dimension_semantics<parallel>], iteration_bounds = array<i64: 4>, scalar_prefetch = 0 : i64, scratch_operands = 0 : i64, tpu.core_type = #tpu.core_type<tc>, window_params = [{transform_indices = @transform_0, window_bounds = array<i64: 256, 128>}, {pipeline_mode = #tpu.pipeline_mode<synchronous>, transform_indices = @transform_1, window_bounds = array<i64: 128, 128>}, {pipeline_mode = #tpu.pipeline_mode<synchronous>, transform_indices = @transform_2, window_bounds = array<i64: 1, 128>}, {transform_indices = @transform_3, window_bounds = array<i64: 1>}, {transform_indices = @transform_4, window_bounds = array<i64: 256, 128>}, {transform_indices = @transform_5, window_bounds = array<i64: 1, 2, 128>}]} {
    %c0 = arith.constant 0 : index
    %c0_0 = arith.constant 0 : index
    %0 = vector.load %arg1[%c0, %c0_0] : memref<256x128xbf16, #tpu.memory_space<vmem>>, vector<256x128xbf16>
    %c0_1 = arith.constant 0 : index
    %c0_2 = arith.constant 0 : index
    %1 = vector.load %arg2[%c0_1, %c0_2] : memref<128x128xbf16, #tpu.memory_space<vmem>>, vector<128x128xbf16>
    %cst = arith.constant dense<0.000000e+00> : vector<256x128xf32>
    %2 = tpu.matmul %0, %1, %cst {dimension_numbers = #tpu.dot_dimension_numbers<[1], [0], [0], [1], [0, 0, 1, 1], [], []>} : vector<256x128xbf16>, vector<128x128xbf16>, vector<256x128xf32> -> vector<256x128xf32>
    %c0_3 = arith.constant 0 : index
    %c0_4 = arith.constant 0 : index
    %3 = vector.load %arg3[%c0_3, %c0_4] : memref<1x128xf32, #tpu.memory_space<vmem>>, vector<1x128xf32>
    %4 = vector.broadcast %3 : vector<1x128xf32> to vector<256x128xf32>
    %5 = arith.addf %2, %4 : vector<256x128xf32>
    %c0_5 = arith.constant 0 : index
    %6 = memref.load %arg4[%c0_5] : memref<1xf32, #tpu.memory_space<smem>>
    %cst_6 = arith.constant 0.000000e+00 : f32
    %7 = vector.broadcast %cst_6 : f32 to vector<256x128xf32>
    %8 = arith.cmpf oge, %5, %7 : vector<256x128xf32>
    %9 = vector.broadcast %6 : f32 to vector<256x128xf32>
    %10 = arith.mulf %9, %5 : vector<256x128xf32>
    %11 = arith.select %8, %5, %10 : vector<256x128xi1>, vector<256x128xf32>
    %c0_7 = arith.constant 0 : index
    %c0_8 = arith.constant 0 : index
    %12 = vector.load %arg5[%c0_7, %c0_8] : memref<256x128xf32, #tpu.memory_space<vmem>>, vector<256x128xf32>
    tpu.vector_store %arg5[%c0_7, %c0_8], %11 {strides = array<i32>} : memref<256x128xf32, #tpu.memory_space<vmem>>, vector<256x128xf32>,
    %c256_i32 = arith.constant 256 : i32
    %13 = arith.muli %arg0, %c256_i32 : i32
    %14 = tpu.iota {dimensions = array<i32: 0>} : vector<256x128xi32>
    %15 = vector.broadcast %13 : i32 to vector<256x128xi32>
    %16 = arith.addi %15, %14 : vector<256x128xi32>
    %c1024_i32 = arith.constant 1024 : i32
    %17 = vector.broadcast %c1024_i32 : i32 to vector<256x128xi32>
    %18 = arith.cmpi slt, %16, %17 : vector<256x128xi32>
    %cst_9 = arith.constant 0.000000e+00 : f32
    %19 = vector.broadcast %cst_9 : f32 to vector<256x128xf32>
    %20 = arith.select %18, %11, %19 : vector<256x128xi1>, vector<256x128xf32>
    %cst_10 = arith.constant dense<0.000000e+00> : vector<128xf32>
    %21 = vector.multi_reduction <add>, %20, %cst_10 [0] : vector<256x128xf32> to vector<128xf32>
    %22 = vector.shape_cast %21 : vector<128xf32> to vector<1x128xf32>
    %23 = arith.mulf %20, %20 : vector<256x128xf32>
    %cst_11 = arith.constant dense<0.000000e+00> : vector<128xf32>
    %24 = vector.multi_reduction <add>, %23, %cst_11 [0] : vector<256x128xf32> to vector<128xf32>
    %25 = vector.shape_cast %24 : vector<128xf32> to vector<1x128xf32>
    %26 = tpu.concatenate %22, %25 in 0 : vector<1x128xf32>, vector<1x128xf32> -> vector<2x128xf32>
    %27 = vector.shape_cast %26 : vector<2x128xf32> to vector<1x2x128xf32>
    %c0_12 = arith.constant 0 : index
    %c0_13 = arith.constant 0 : index
    %c0_14 = arith.constant 0 : index
    %28 = vector.load %arg6[%c0_12, %c0_13, %c0_14] : memref<1x2x128xf32, #tpu.memory_space<vmem>>, vector<1x2x128xf32>
    tpu.vector_store %arg6[%c0_12, %c0_13, %c0_14], %27 {strides = array<i32>} : memref<1x2x128xf32, #tpu.memory_space<vmem>>, vector<1x2x128xf32>,
    return
  }
  func.func @transform_0(%arg0: i32) -> (i32, i32) {
    %c0_i32 = arith.constant 0 : i32
    %c0_i32_0 = arith.constant 0 : i32
    return %arg0, %c0_i32 : i32, i32
  }
  func.func @transform_1(%arg0: i32) -> (i32, i32) {
    %c0_i32 = arith.constant 0 : i32
    %c0_i32_0 = arith.constant 0 : i32
    %c0_i32_1 = arith.constant 0 : i32
    return %c0_i32, %c0_i32_0 : i32, i32
  }
  func.func @transform_2(%arg0: i32) -> (i32, i32) {
    %c0_i32 = arith.constant 0 : i32
    %c0_i32_0 = arith.constant 0 : i32
    %c0_i32_1 = arith.constant 0 : i32
    return %c0_i32, %c0_i32_0 : i32, i32
  }
  func.func @transform_3(%arg0: i32) -> i32 {
    %c0_i32 = arith.constant 0 : i32
    %c0_i32_0 = arith.constant 0 : i32
    return %c0_i32 : i32
  }
  func.func @transform_4(%arg0: i32) -> (i32, i32) {
    %c0_i32 = arith.constant 0 : i32
    %c0_i32_0 = arith.constant 0 : i32
    return %arg0, %c0_i32 : i32, i32
  }
  func.func @transform_5(%arg0: i32) -> (i32, i32, i32) {
    %c0_i32 = arith.constant 0 : i32
    %c0_i32_0 = arith.constant 0 : i32
    %c0_i32_1 = arith.constant 0 : i32
    return %arg0, %c0_i32, %c0_i32_0 : i32, i32, i32
  }
}

</mosaic_0001>

<bundles_post_ra>
// kernel: tpu_custom_call.1
= control target key start
LH: loop header
LB: loop body
LE: loop exit
PB: predicated region body
PF: predicated region fallthrough
CT: control target
= control target key end

     0   :  { %s2230_s0 = inlined_call_operand.hbm [shape: bf16[1024,128], index: 0, kind: input, shape index: {}]   ;;  %s2231_s1 = inlined_call_operand.hbm [shape: bf16[128,128], index: 1, kind: input, shape index: {}]   ;;  %s2232_s2 = inlined_call_operand.vmem [shape: f32[1,128], index: 2, kind: input, shape index: {}]   ;;  %s2233_s3 = inlined_call_operand.<no memory space> [shape: f32[1], index: 3, kind: input, shape index: {}]   ;;  %s2234_s4 = inlined_call_operand.hbm [shape: f32[1024,128], index: 4, kind: output, shape index: {0}]   ;;  %s2235_s5 = inlined_call_operand.hbm [shape: f32[4,2,128], index: 5, kind: output, shape index: {1}]  }
   0x1   :  { %11 = sst [smem:[#allocation2]] %s2233_s3 }
   0x2   :  { %12 = vsyncpa [#allocation4], 0 }
   0x3   :  { %14 = vsyncpa [#allocation4 + $0x1], 0 }
   0x4   :  { %15 = vsyncpa [#allocation7], 0 }
   0x5   :  { %16 = vsyncpa [#allocation5], 0 }
   0x6   :  { %18 = vsyncpa [#allocation5 + $0x1], 0 }
   0x7   :  { %19 = vsyncpa [#allocation10], 0 }
   0x8   :  { %21 = vsyncpa [#allocation10 + $0x1], 0  ;;  %s1578_s20 = smov 0   ;;  %s1580_s21 = smov 0  }
   0x9   :  { %s1582_s22 = smov 0   ;;  %s1584_s23 = smov 0  }
   0xa LB: > { %s1599_s3 = sadd.s32 4294967295, %s1535_s23   ;;  %s1150_s24 = sadd.s32 4294967294, %s1535_s23   ;;  %s1535_s23 = sphi %s1584_s23, %s2254_s23   ;;  %s1531_s22 = sphi %s1582_s22, %s2253_s22   ;;  %s1527_s21 = sphi %s1580_s21, %s2252_s21   ;;  %s1523_s20 = sphi %s1578_s20, %s2251_s20  }
   0xb   : > { %p47_p0 = scmp.ne.s32.totalorder %s1527_s21, %s1523_s20  ;;  %p2236_p1 = scmp.eq.s32.totalorder %s1599_s3, 0 }
   0xc   : > { %p140_p3 = scmp.eq.s32.totalorder %s1150_s24, 3  ;;  %p1151_p5 = scmp.ge.s32.totalorder %s1535_s23, 1 }
   0xd   : > { %p1608_p4 = por %p2236_p1, %p47_p0  ;;  %p173_p7 = scmp.lt.s32.totalorder %s1535_s23, 5 }
   0xe   : > { %p1613_p6 = por %p140_p3, %p47_p0  ;;  %s1537_s28 = smov [#allocation6]  }
   0xf   : > { %s2239_s25 = scalar_select %p1608_p4, 1, 0 }
  0x10   : > { %s2240_s26 = scalar_select %p1613_p6, 1, 0 }
  0x11   : > { %p1618_p8 = pnand %p1151_p5, %p173_p7  ;;  %s185_s29 = sshll.u32 %s1537_s28, 4  ;;  %s186_s29 = int_to_ptr.vmem [resolvable:$true] %s185_s29 }
  0x12   : > { %s1631_s6 = sadd.s32 1, %s1535_s23   ;;  %s34_s7 = sadd.s32 1, %s1531_s22 }
  0x13   : > { %s2241_s27 = scalar_select %p1618_p8, 1, 0 }
  0x14   : > { %p1295_p9 = pneg %p1618_p8  ;;  %s31_s8 = ssub.s32 %s1535_s23, %s1631_s6 }
  0x15   : > { %s1375_s11 = scalar_lea.hbm %s2231_s1, 1024 }
  0x16   : > { %p1626_p10 = pnand %p1295_p9, %p2236_p1  ;;  %p1376_p11 = scmp.ne.s32.totalorder %s2231_s1, %s1375_s11 }
  0x17   : > { %p1382_p3 = scmp.lt.u32.totalorder %s1375_s11, %s2231_s1 }
  0x18   : > { %p1377_p12 = pneg %p1626_p10 }
  0x1a   : > { %p1378_p13 = pnand %p1377_p12, %p1376_p11 }
  0x1c   : > { %p1379_p0 = pneg %p1378_p13 }
  0x1e   : > { %p1384_p5 = pnand %p1382_p3, %p1379_p0 }
  0x20   : > { %1387 = shalt.err (!%p1384_p5)
}
  0x21   : > { %s1388_s16 = scalar_lea.vmem %s186_s29, 1024  ;;  %p1396_p2 = scmp.lt.s32.totalorder %s186_s29, %s186_s29 }
  0x22   : > { %p1389_p7 = scmp.ne.s32.totalorder %s186_s29, %s1388_s16  ;;  %p1397_p6 = scmp.lt.s32.totalorder %s1388_s16, %s1388_s16 }
  0x24   : > { %p1391_p9 = pnand %p1389_p7, %p1377_p12  ;;  %p1398_p4 = por %p1397_p6, %p1396_p2 }
  0x26   : > { %p1392_p1 = pneg %p1391_p9 }
  0x28   : > { %p1399_p8 = pnand %p1398_p4, %p1392_p1 }
  0x2a   : > { %1402 = shalt.err (!%p1399_p8)
}
  0x2b   : > { %s1538_s17 = smov 64   ;;  %s1539_s18 = smov 4  }
  0x2c   : > { %1298 = dma.hbm_to_vmem [thread:$0]  (!%p1626_p10), %s2231_s1, 1024, %s186_s29, [#allocation7], %s1538_s17, %s1538_s17, %s1539_s18  }
  0x2d   : > { %p32_p1 = scmp.eq.s32.totalorder %s31_s8, 0  ;;  %p41_p2 = scmp.ne.s32.totalorder %s1531_s22, %s1527_s21 }
  0x2e   : > { %p42_p4 = scmp.eq.s32.totalorder %s1535_s23, 0  ;;  %p1311_p6 = scmp.lt.s32.totalorder %s1535_s23, 4 }
  0x2f   : > { %s1660_s28 = scalar_select %p32_p1, %s1531_s22, %s34_s7  }
  0x30   : > { %p43_p8 = por %p42_p4, %p41_p2  ;;  %p2243_p11 = scmp.eq.s32.totalorder %s1599_s3, 3 }
  0x31   : > { %s205_s30 = sand.u32 1, %s1531_s22   ;;  %s1195_s10 = sshll.u32 %s1535_s23, 11 }
  0x32   : > { %p1664_p12 = por %p2243_p11, %p41_p2  ;;  %s1154_s11 = sshll.u32 %s205_s30, 7 }
  0x33   : > { %s1673_s14 = scalar_lea.hbm %s2230_s0, %s1195_s10  ;;  %s209_s29 = scalar_lea.vmem [#allocation3], %s1154_s11 }
  0x34   : > { %s216_s7 = sshll.u32 %s209_s29, 4  ;;  %p1675_p10 = pnand %p1311_p6, %p43_p8  ;;  %s1679_s7 = int_to_ptr.vmem [resolvable:$true] %s216_s7 }
  0x35   : > { %s1681_s15 = scalar_lea.sflag [#allocation4], %s205_s30  ;;  %s1403_s16 = scalar_lea.hbm %s1673_s14, 2048 }
  0x36   : > { %p1404_p13 = scmp.ne.s32.totalorder %s1673_s14, %s1403_s16  ;;  %p1405_p0 = pneg %p1675_p10 }
  0x37   : > { %s1408_s10 = scalar_lea.hbm %s2230_s0, 8192  ;;  %p1409_p7 = scmp.lt.u32.totalorder %s1673_s14, %s2230_s0 }
  0x38   : > { %p1406_p3 = pnand %p1405_p0, %p1404_p13  ;;  %p1410_p9 = scmp.lt.u32.totalorder %s1408_s10, %s1403_s16 }
  0x39   : > { %p1412_p2 = scmp.lt.u32.totalorder %s1403_s16, %s1673_s14 }
  0x3a   : > { %p1407_p5 = pneg %p1406_p3  ;;  %p1411_p1 = por %p1410_p9, %p1409_p7 }
  0x3c   : > { %p1413_p4 = por %p1412_p2, %p1411_p1 }
  0x3e   : > { %p1414_p6 = pnand %p1413_p4, %p1407_p5 }
  0x40   : > { %1417 = shalt.err (!%p1414_p6)
}
  0x41   : > { %s1418_s30 = scalar_lea.vmem %s1679_s7, 2048  ;;  %s1540_s13 = smov [#allocation3]  }
  0x42   : > { %p1419_p8 = scmp.ne.s32.totalorder %s1679_s7, %s1418_s30  ;;  %s1423_s29 = sshll.u32 %s1540_s13, 4  ;;  %s1424_s29 = int_to_ptr.vmem [resolvable:$false] %s1423_s29 }
  0x43   : > { %s1425_s19 = scalar_lea.vmem %s1424_s29, 4096  ;;  %p1426_p3 = scmp.lt.s32.totalorder %s1679_s7, %s1424_s29 }
  0x44   : > { %p1421_p11 = pnand %p1419_p8, %p1405_p0  ;;  %p1427_p7 = scmp.lt.s32.totalorder %s1425_s19, %s1418_s30 }
  0x46   : > { %p1422_p13 = pneg %p1421_p11  ;;  %p1428_p9 = por %p1427_p7, %p1426_p3 }
  0x48   : > { %p1429_p1 = pnand %p1428_p9, %p1422_p13 }
  0x4a   : > { %1432 = shalt.err (!%p1429_p1)
}
  0x4b   : > { %1302 = dma.hbm_to_vmem [thread:$0]  (!%p1675_p10), %s1673_s14, 2048, %s1679_s7, %s1681_s15, %s1538_s17, %s1538_s17, %s1539_s18  }
  0x4c   : > { %p2246_p0 = scmp.ne.s32.totalorder %s2241_s27, 0 }
  0x4d   : > { %s1715_s16 = sand.u32 (!%p2246_p0), 1, %s1527_s21   ;;  %p2247_p5 = scmp.ne.s32.totalorder (!%p2246_p0), %s2239_s25, 0 }
  0x4e   : > { %228 = sbr.rel (%p2246_p0) target bundleno = 452 (0x1c4), region = 36  ;;  %s1158_s24 = sshll.u32 (!%p2246_p0), %s1715_s16, 7 }
  0x4f   : > { %s231_s10 = scalar_lea.sflag (!%p2246_p0), [#allocation4], %s1715_s16  ;;  %s1719_s11 = scalar_lea.vmem (!%p2246_p0), [#allocation3], %s1158_s24 }
  0x55   : > { %1506 = dma.done.wait (%p2247_p5), %s231_s10, 2048  }
  0x56   : > { %1508 = vsyncadd (%p2247_p5), %s231_s10, 4294965248  ;;  %p2248_p10 = scmp.eq.s32.totalorder %s1599_s3, 0 }
  0x58   : > { %1510 = dma.done.wait (%p2248_p10), [#allocation7], 1024   ;;  %p2249_p2 = pmov %p2248_p10 }
  0x59   : > { %v1351_v0 = vld [vmem:[#allocation6] sm:$0xff]   ;;  %v1352_v1 = vld [vmem:[#allocation6 + $0x8] sm:$0xff]   ;;  %v1353_v2 = vld [vmem:[#allocation6 + $0x10] sm:$0xff]   ;;  %v764_v24 = vlaneseq  ;;  %s633_s25 = sld [smem:[#allocation2]]  ;;  %s1187_s27 = sshll.u32 %s1599_s3, 8 }
  0x5a   : > { %1512 = vsyncadd (%p2249_p2), [#allocation7], 4294966272  ;;  %1221 = vmatprep.subr.bf16.mxu0 %v1351_v0  ;;  %1269 = vmatprep.subr.bf16.mxu1 %v1351_v0  ;;  %v1354_v3 = vld [vmem:[#allocation6 + $0x18] sm:$0xff]   ;;  %v1359_v4 = vld [vmem:[%s1719_s11] sm:$0xff]   ;;  %v1749_v27 = vstv %s1187_s27  ;;  %s1160_s14 = sshll.u32 %s1715_s16, 8  ;;  %s1196_s8 = sshll.u32 %s1599_s3, 12 }
  0x5b   : > { %1222 = vmatpush3.bf16.msra.mxu0 %v1351_v0  ;;  %1277 = vmatpush3.bf16.msra.mxu1 %v1351_v0  ;;  %v1355_v5 = vld [vmem:[#allocation6 + $0x20] sm:$0xff]   ;;  %v1356_v6 = vld [vmem:[#allocation6 + $0x28] sm:$0xff]   ;;  %v1357_v8 = vld [vmem:[#allocation6 + $0x30] sm:$0xff]   ;;  %v1745_v25 = vshrl.u32 %v764_v24, 7  ;;  %s1885_s7 = scalar_lea.vmem [#allocation8], %s1160_s14  ;;  %s2146_s13 = scalar_lea.hbm %s2234_s4, %s1196_s8 }
  0x5c   : > { %1223 = vmatprep.subr.bf16.mxu0 %v1352_v1  ;;  %1270 = vmatprep.subr.bf16.mxu1 %v1352_v1  ;;  %v1367_v7 = vld [vmem:[%s1719_s11 + $0x40] sm:$0xff]   ;;  %v1358_v9 = vld [vmem:[#allocation6 + $0x38] sm:$0xff]   ;;  %v1360_v10 = vld [vmem:[%s1719_s11 + $0x8] sm:$0xff]   ;;  %s1022_s15 = sshll.u32 %s1885_s7, 4  ;;  %s1004_s29 = scalar_lea.sflag [#allocation5], %s1715_s16  ;;  %s2148_s15 = int_to_ptr.vmem [resolvable:$true] %s1022_s15 }
  0x5d   : > { %1237 = vmatprep.mubr.bf16.mxu0 %v1359_v4  ;;  %1253 = vmatprep.mubr.bf16.mxu1 %v1367_v7  ;;  %v1368_v11 = vld [vmem:[%s1719_s11 + $0x48] sm:$0xff]   ;;  %v1361_v12 = vld [vmem:[%s1719_s11 + $0x10] sm:$0xff]   ;;  %v1362_v14 = vld [vmem:[%s1719_s11 + $0x18] sm:$0xff]   ;;  %v767_v26 = vadd.s32 16, %v1745_v25  ;;  %v768_v28 = vadd.s32 24, %v1745_v25  ;;  %v766_v29 = vadd.s32 8, %v1745_v25  ;;  %v1764_v36 = vadd.s32 %v1749_v27, %v1745_v25 }
  0x5e   : > { %v1369_v13 = vld [vmem:[%s1719_s11 + $0x50] sm:$0xff]   ;;  %v1370_v15 = vld [vmem:[%s1719_s11 + $0x58] sm:$0xff]   ;;  %v1363_v16 = vld [vmem:[%s1719_s11 + $0x20] sm:$0xff]   ;;  %v771_v30 = vadd.s32 48, %v1745_v25  ;;  %v769_v31 = vadd.s32 32, %v1745_v25  ;;  %v772_v32 = vadd.s32 56, %v1745_v25 }
  0x5f   : > { %1224 = vmatpush3.bf16.msra.mxu0 %v1352_v1  ;;  %1278 = vmatpush3.bf16.msra.mxu1 %v1352_v1  ;;  %v1371_v17 = vld [vmem:[%s1719_s11 + $0x60] sm:$0xff]   ;;  %v1364_v18 = vld [vmem:[%s1719_s11 + $0x28] sm:$0xff]   ;;  %v1365_v20 = vld [vmem:[%s1719_s11 + $0x30] sm:$0xff]   ;;  %v770_v33 = vadd.s32 40, %v1745_v25  ;;  %v1757_v34 = vstv %s633_s25  ;;  %v1760_v35 = vadd.s32 %v1749_v27, %v767_v26  ;;  %v1767_v37 = vadd.s32 %v1749_v27, %v768_v28  ;;  %s1433_s19 = scalar_lea.vmem %s2148_s15, 4096  ;;  %s1541_s24 = smov [#allocation8]  }
  0x60   : > { %1225 = vmatprep.subr.bf16.mxu0 %v1353_v2  ;;  %1271 = vmatprep.subr.bf16.mxu1 %v1353_v2  ;;  %v1372_v19 = vld [vmem:[%s1719_s11 + $0x68] sm:$0xff]   ;;  %v1373_v21 = vld [vmem:[%s1719_s11 + $0x70] sm:$0xff]   ;;  %v1366_v22 = vld [vmem:[%s1719_s11 + $0x38] sm:$0xff]   ;;  %v1770_v38 = vadd.s32 %v1749_v27, %v766_v29  ;;  %v1773_v39 = vadd.s32 %v1749_v27, %v771_v30  ;;  %v1776_v40 = vadd.s32 %v1749_v27, %v769_v31  ;;  %v775_v43 = vadd.s32 80, %v1745_v25  ;;  %p1434_p4 = scmp.ne.s32.totalorder %s2148_s15, %s1433_s19  ;;  %s1437_s10 = sshll.u32 %s1541_s24, 4  ;;  %s1438_s10 = int_to_ptr.vmem [resolvable:$false] %s1437_s10 }
  0x61   : > { %v1374_v23 = vld [vmem:[%s1719_s11 + $0x78] sm:$0xff]   ;;  %v1779_v41 = vadd.s32 %v1749_v27, %v772_v32  ;;  %v1782_v42 = vadd.s32 %v1749_v27, %v770_v33  ;;  %v773_v44 = vadd.s32 64, %v1745_v25  ;;  %v776_v45 = vadd.s32 88, %v1745_v25  ;;  %v1817_v63 = vld [vmem:[%s2232_s2] ss:$0 sm:$0xff]  ;;  %s1439_s11 = scalar_lea.vmem %s1438_s10, 8192  ;;  %p1440_p11 = scmp.lt.s32.totalorder %s2148_s15, %s1438_s10 }
  0x62   : > { %v774_v46 = vadd.s32 72, %v1745_v25  ;;  %v779_v47 = vadd.s32 112, %v1745_v25  ;;  %v777_v48 = vadd.s32 96, %v1745_v25  ;;  %v780_v49 = vadd.s32 120, %v1745_v25  ;;  %p1435_p6 = pnand %p1434_p4, %p1664_p12  ;;  %p1441_p13 = scmp.lt.s32.totalorder %s1439_s11, %s1433_s19 }
  0x63   : > { %1226 = vmatpush3.bf16.msra.mxu0 %v1353_v2  ;;  %1279 = vmatpush3.bf16.msra.mxu1 %v1353_v2  ;;  %v778_v50 = vadd.s32 104, %v1745_v25  ;;  %vm832_vm0 = vcmp.lt.s32.totalorder %v1760_v35, 1024  ;;  %v783_v51 = vadd.s32 144, %v1745_v25  ;;  %v781_v52 = vadd.s32 128, %v1745_v25 }
  0x64   : > { %1227 = vmatprep.subr.bf16.mxu0 %v1354_v3  ;;  %1272 = vmatprep.subr.bf16.mxu1 %v1354_v3  ;;  %v784_v53 = vadd.s32 152, %v1745_v25  ;;  %v782_v54 = vadd.s32 136, %v1745_v25  ;;  %vm830_vm1 = vcmp.lt.s32.totalorder %v1764_v36, 1024  ;;  %v787_v55 = vadd.s32 176, %v1745_v25  ;;  %p1436_p8 = pneg %p1435_p6  ;;  %p1442_p3 = por %p1441_p13, %p1440_p11 }
  0x65   : > { %v785_v56 = vadd.s32 160, %v1745_v25  ;;  %v788_v57 = vadd.s32 184, %v1745_v25  ;;  %v786_v58 = vadd.s32 168, %v1745_v25  ;;  %v1803_v59 = vadd.s32 %v1749_v27, %v775_v43 }
  0x66   : > { %v1806_v60 = vadd.s32 %v1749_v27, %v773_v44  ;;  %v1809_v61 = vadd.s32 %v1749_v27, %v776_v45  ;;  %v1812_v62 = vadd.s32 %v1749_v27, %v774_v46  ;;  %vm831_vm2 = vcmp.lt.s32.totalorder %v1770_v38, 1024  ;;  %p1443_p7 = pnand %p1442_p3, %p1436_p8 }
  0x67   : > { %1228 = vmatpush3.bf16.msra.mxu0 %v1354_v3  ;;  %1280 = vmatpush3.bf16.msra.mxu1 %v1354_v3  ;;  %v1821_v0 = vadd.s32 %v1749_v27, %v779_v47  ;;  %v1824_v1 = vadd.s32 %v1749_v27, %v777_v48  ;;  %v1827_v2 = vadd.s32 %v1749_v27, %v780_v49  ;;  %vm833_vm3 = vcmp.lt.s32.totalorder %v1767_v37, 1024 }
  0x68   : > { %1229 = vmatprep.subr.bf16.mxu0 %v1355_v5  ;;  %1273 = vmatprep.subr.bf16.mxu1 %v1355_v5  ;;  %v1830_v3 = vadd.s32 %v1749_v27, %v778_v50  ;;  %v1834_v4 = vadd.s32 %v1749_v27, %v783_v51  ;;  %v1843_v7 = vadd.s32 %v1749_v27, %v782_v54  ;;  %v792_v24 = vadd.s32 216, %v1745_v25 }
  0x69   : > { %v790_v26 = vadd.s32 200, %v1745_v25  ;;  %vm836_vm7 = vcmp.lt.s32.totalorder %v1773_v39, 1024  ;;  %vm834_vm8 = vcmp.lt.s32.totalorder %v1776_v40, 1024  ;;  %vm837_vm11 = vcmp.lt.s32.totalorder %v1779_v41, 1024 }
  0x6a   : > { %v1908_v36 = vadd.s32 %v1749_v27, %v792_v24  ;;  %vm835_vm13 = vcmp.lt.s32.totalorder %v1782_v42, 1024  ;;  %vm840_vm15 = vcmp.lt.s32.totalorder %v1803_v59, 1024 }
  0x6b   : > { %1230 = vmatpush3.bf16.msra.mxu0 %v1355_v5  ;;  %1281 = vmatpush3.bf16.msra.mxu1 %v1355_v5  ;;  %v1837_v5 = vadd.s32 %v1749_v27, %v781_v52 }
  0x6c   : > { %1231 = vmatprep.subr.bf16.mxu0 %v1356_v6  ;;  %1274 = vmatprep.subr.bf16.mxu1 %v1356_v6 }
  0x6f   : > { %1232 = vmatpush3.bf16.msra.mxu0 %v1356_v6  ;;  %1282 = vmatpush3.bf16.msra.mxu1 %v1356_v6  ;;  %v1840_v6 = vadd.s32 %v1749_v27, %v784_v53 }
  0x70   : > { %1233 = vmatprep.subr.bf16.mxu0 %v1357_v8  ;;  %1275 = vmatprep.subr.bf16.mxu1 %v1357_v8 }
  0x73   : > { %1234 = vmatpush3.bf16.msra.mxu0 %v1357_v8  ;;  %1283 = vmatpush3.bf16.msra.mxu1 %v1357_v8 }
  0x74   : > { %1235 = vmatprep.subr.bf16.mxu0 %v1358_v9  ;;  %1276 = vmatprep.subr.bf16.mxu1 %v1358_v9 }
  0x77   : > { %1236 = vmatpush3.bf16.msra.mxu0 %v1358_v9  ;;  %1284 = vmatpush3.bf16.msra.mxu1 %v1358_v9 }
  0x7a   : > { %1238 = vmatmul.mubr.bf16.vlgmr.msra.gmra.mrb[0].mxu0 %v1360_v10  ;;  %1254 = vmatmul.mubr.bf16.vlgmr.msra.gmra.mrb[0].mxu1 %v1368_v11  ;;  %v1847_v10 = vadd.s32 %v1749_v27, %v787_v55  ;;  %v1850_v11 = vadd.s32 %v1749_v27, %v785_v56  ;;  %v1911_v56 = vadd.s32 %v1749_v27, %v790_v26 }
  0x7b   : > { %1241 = vmatprep.mubr.bf16.mxu0 %v1361_v12  ;;  %1257 = vmatprep.mubr.bf16.mxu1 %v1369_v13  ;;  %v1853_v12 = vadd.s32 %v1749_v27, %v788_v57  ;;  %v1856_v13 = vadd.s32 %v1749_v27, %v786_v58 }
  0x82   : > { %1242 = vmatmul.mubr.bf16.gmra.mrb[4].mxu0 %v1362_v14  ;;  %1258 = vmatmul.mubr.bf16.gmra.mrb[4].mxu1 %v1370_v15 }
  0x83   : > { %1245 = vmatprep.mubr.bf16.mxu0 %v1363_v16  ;;  %1261 = vmatprep.mubr.bf16.mxu1 %v1371_v17 }
  0x8a   : > { %1246 = vmatmul.mubr.bf16.gmra.mrb[8].mxu0 %v1364_v18  ;;  %1262 = vmatmul.mubr.bf16.gmra.mrb[8].mxu1 %v1372_v19  ;;  %v791_v18 = vadd.s32 208, %v1745_v25  ;;  %v789_v19 = vadd.s32 192, %v1745_v25 }
  0x8b   : > { %1249 = vmatprep.mubr.bf16.mxu0 %v1365_v20  ;;  %1265 = vmatprep.mubr.bf16.mxu1 %v1373_v21 }
  0x8c   : > { %v1881_v46 = vadd.s32 %v1749_v27, %v791_v18  ;;  %v1899_v53 = vadd.s32 %v1749_v27, %v789_v19 }
  0x92   : > { %1250 = vmatmul.mubr.bf16.gmra.mrb[12].mxu0 %v1366_v22  ;;  %1266 = vmatmul.mubr.bf16.gmra.mrb[12].mxu1 %v1374_v23 }
 0x14d   : > { %v1239_v8 = vpop.f32.mrb[0].mxu0  ;;  %v1255_v9 = vpop.f32.mrb[0].mxu1 }
 0x14e   : > { %v515_v14 = vadd.f32 %v1239_v8, %v1817_v63  ;;  %v506_v15 = vpop.f32.mrb[1].mxu0  ;;  %v579_v16 = vadd.f32 %v1255_v9, %v1817_v63  ;;  %v570_v17 = vpop.f32.mrb[1].mxu1 }
 0x14f   : > { %v507_v20 = vadd.f32 %v1817_v63, %v506_v15  ;;  %v1240_v21 = vpop.f32.mrb[2].mxu0  ;;  %v1864_v22 = vadd.f32 %v1817_v63, %v570_v17  ;;  %v1866_v23 = vpop.f32.mrb[2].mxu1 }
 0x150   : > { %vm636_vm4 = vcmp.ge.f32.partialorder %v515_v14, 0.0  ;;  %v669_v28 = vmul.f32 %v1757_v34, %v515_v14  ;;  %v518_v29 = vadd.f32 %v1240_v21, %v1817_v63  ;;  %v509_v30 = vpop.f32.mrb[3].mxu0  ;;  %vm652_vm5 = vcmp.ge.f32.partialorder %v579_v16, 0.0  ;;  %v1872_v31 = vpop.f32.mrb[3].mxu1 }
 0x151   : > { %vm634_vm6 = vcmp.ge.f32.partialorder %v507_v20, 0.0  ;;  %v667_v32 = vmul.f32 %v1757_v34, %v507_v20  ;;  %v510_v33 = vadd.f32 %v1817_v63, %v509_v30  ;;  %v685_v43 = vmul.f32 %v1757_v34, %v579_v16 }
 0x152   : > { %v701_v44 = vsel %vm636_vm4, %v515_v14, %v669_v28  ;;  %vm637_vm9 = vcmp.ge.f32.partialorder %v518_v29, 0.0  ;;  %v670_v45 = vmul.f32 %v1757_v34, %v518_v29  ;;  %vm650_vm12 = vcmp.ge.f32.partialorder %v1864_v22, 0.0 }
 0x153   : > { %733 = vst [vmem:[%s1885_s7 + $0x10] sm:$0xff] %v701_v44  ;;  %v864_v47 = vsel %vm832_vm0, %v701_v44, 0.0  ;;  %v699_v48 = vsel %vm634_vm6, %v507_v20, %v667_v32  ;;  %vm635_vm10 = vcmp.ge.f32.partialorder %v510_v33, 0.0  ;;  %v668_v49 = vmul.f32 %v1757_v34, %v510_v33 }
 0x154   : > { %731 = vst [vmem:[%s1885_s7] sm:$0xff] %v699_v48  ;;  %v862_v50 = vsel %vm830_vm1, %v699_v48, 0.0  ;;  %v702_v51 = vsel %vm637_vm9, %v518_v29, %v670_v45  ;;  %v1896_v52 = vsel %vm652_vm5, %v579_v16, %v685_v43  ;;  %v933_v57 = vmul.f32 %v864_v47, %v864_v47 }
 0x155   : > { %734 = vst [vmem:[%s1885_s7 + $0x18] sm:$0xff] %v702_v51  ;;  %v700_v35 = vsel %vm635_vm10, %v510_v33, %v668_v49  ;;  %v1243_v54 = vpop.f32.mrb[4].mxu0  ;;  %749 = vst [vmem:[%s1885_s7 + $0x90] sm:$0xff] %v1896_v52  ;;  %v1905_v55 = vpop.f32.mrb[4].mxu1  ;;  %v931_v58 = vmul.f32 %v862_v50, %v862_v50  ;;  %v865_v16 = vsel %vm833_vm3, %v702_v51, 0.0  ;;  %v683_v37 = vmul.f32 %v1757_v34, %v1864_v22 }
 0x156   : > { %732 = vst [vmem:[%s1885_s7 + $0x8] sm:$0xff] %v700_v35  ;;  %v863_v8 = vsel %vm831_vm2, %v700_v35, 0.0  ;;  %v531_v9 = vadd.f32 %v1243_v54, %v1817_v63  ;;  %v522_v14 = vpop.f32.mrb[5].mxu0  ;;  %v1918_v15 = vpop.f32.mrb[5].mxu1  ;;  %vm838_vm1 = vcmp.lt.s32.totalorder %v1806_v60, 1024  ;;  %v934_v45 = vmul.f32 %v865_v16, %v865_v16 }
 0x157   : > { %v894_v17 = vadd.f32 %v863_v8, %v862_v50  ;;  %v932_v18 = vmul.f32 %v863_v8, %v863_v8  ;;  %v523_v19 = vadd.f32 %v1817_v63, %v522_v14  ;;  %v1244_v20 = vpop.f32.mrb[6].mxu0  ;;  %v1923_v21 = vpop.f32.mrb[6].mxu1  ;;  %vm841_vm3 = vcmp.lt.s32.totalorder %v1809_v61, 1024 }
 0x158   : > { %vm640_vm14 = vcmp.ge.f32.partialorder %v531_v9, 0.0  ;;  %v673_v38 = vmul.f32 %v1757_v34, %v531_v9  ;;  %v534_v24 = vadd.f32 %v1244_v20, %v1817_v63  ;;  %v525_v26 = vpop.f32.mrb[7].mxu0  ;;  %v1930_v28 = vpop.f32.mrb[7].mxu1  ;;  %v1944_v54 = vadd.s32 240, %v1745_v25 }
 0x159   : > { %v895_v29 = vadd.f32 %v894_v17, %v864_v47  ;;  %v963_v30 = vadd.f32 %v932_v18, %v931_v58  ;;  %vm638_vm0 = vcmp.ge.f32.partialorder %v523_v19, 0.0  ;;  %v671_v32 = vmul.f32 %v1757_v34, %v523_v19 }
 0x15a   : > { %v705_v33 = vsel %vm640_vm14, %v531_v9, %v673_v38  ;;  %vm641_vm2 = vcmp.ge.f32.partialorder %v534_v24, 0.0  ;;  %v674_v43 = vmul.f32 %v1757_v34, %v534_v24  ;;  %v526_v44 = vadd.f32 %v1817_v63, %v525_v26 }
 0x15b   : > { %v964_v48 = vadd.f32 %v963_v30, %v933_v57  ;;  %737 = vst [vmem:[%s1885_s7 + $0x30] sm:$0xff] %v705_v33  ;;  %v703_v49 = vsel %vm638_vm0, %v523_v19, %v671_v32  ;;  %v896_v50 = vadd.f32 %v895_v29, %v865_v16  ;;  %v868_v47 = vsel %vm836_vm7, %v705_v33, 0.0 }
 0x15c   : > { %735 = vst [vmem:[%s1885_s7 + $0x20] sm:$0xff] %v703_v49  ;;  %v866_v51 = vsel %vm834_vm8, %v703_v49, 0.0  ;;  %v706_v35 = vsel %vm641_vm2, %v534_v24, %v674_v43  ;;  %vm639_vm4 = vcmp.ge.f32.partialorder %v526_v44, 0.0  ;;  %vm839_vm5 = vcmp.lt.s32.totalorder %v1812_v62, 1024 }
 0x15d   : > { %v897_v58 = vadd.f32 %v896_v50, %v866_v51  ;;  %v935_v8 = vmul.f32 %v866_v51, %v866_v51  ;;  %v965_v9 = vadd.f32 %v964_v48, %v934_v45  ;;  %738 = vst [vmem:[%s1885_s7 + $0x38] sm:$0xff] %v706_v35  ;;  %v1247_v57 = vpop.f32.mrb[8].mxu0  ;;  %v1948_v39 = vpop.f32.mrb[8].mxu1  ;;  %v672_v40 = vmul.f32 %v1757_v34, %v526_v44 }
 0x15e   : > { %v547_v14 = vadd.f32 %v1247_v57, %v1817_v63  ;;  %v538_v16 = vpop.f32.mrb[9].mxu0  ;;  %v1955_v17 = vsel %vm650_vm12, %v1864_v22, %v683_v37  ;;  %v1959_v18 = vadd.f32 %v1866_v23, %v1817_v63  ;;  %v1961_v19 = vpop.f32.mrb[9].mxu1  ;;  %v937_v20 = vmul.f32 %v868_v47, %v868_v47 }
 0x15f   : > { %v966_v38 = vadd.f32 %v965_v9, %v935_v8  ;;  %v869_v24 = vsel %vm837_vm11, %v706_v35, 0.0  ;;  %v539_v26 = vadd.f32 %v1817_v63, %v538_v16  ;;  %v1248_v29 = vpop.f32.mrb[10].mxu0  ;;  %747 = vst [vmem:[%s1885_s7 + $0x80] sm:$0xff] %v1955_v17  ;;  %v1968_v30 = vpop.f32.mrb[10].mxu1  ;;  %v704_v22 = vsel %vm639_vm4, %v526_v44, %v672_v40 }
 0x160   : > { %vm644_vm6 = vcmp.ge.f32.partialorder %v547_v14, 0.0  ;;  %v677_v23 = vmul.f32 %v1757_v34, %v547_v14  ;;  %v550_v37 = vadd.f32 %v1248_v29, %v1817_v63  ;;  %v541_v32 = vpop.f32.mrb[11].mxu0  ;;  %v1973_v33 = vpop.f32.mrb[11].mxu1  ;;  %736 = vst [vmem:[%s1885_s7 + $0x28] sm:$0xff] %v704_v22  ;;  %v867_v41 = vsel %vm835_vm13, %v704_v22, 0.0 }
 0x161   : > { %vm642_vm7 = vcmp.ge.f32.partialorder %v539_v26, 0.0  ;;  %v675_v43 = vmul.f32 %v1757_v34, %v539_v26  ;;  %v542_v45 = vadd.f32 %v1817_v63, %v541_v32  ;;  %vm842_vm8 = vcmp.lt.s32.totalorder %v1824_v1, 1024 }
 0x162   : > { %v898_v44 = vadd.f32 %v897_v58, %v867_v41  ;;  %v936_v48 = vmul.f32 %v867_v41, %v867_v41  ;;  %v709_v49 = vsel %vm644_vm6, %v547_v14, %v677_v23  ;;  %vm645_vm9 = vcmp.ge.f32.partialorder %v550_v37, 0.0 }
 0x163   : > { %vm844_vm10 = vcmp.lt.s32.totalorder %v1821_v0, 1024  ;;  %v938_v50 = vmul.f32 %v869_v24, %v869_v24  ;;  %741 = vst [vmem:[%s1885_s7 + $0x50] sm:$0xff] %v709_v49  ;;  %v872_v42 = vsel %vm840_vm15, %v709_v49, 0.0  ;;  %v707_v51 = vsel %vm642_vm7, %v539_v26, %v675_v43 }
 0x164   : > { %v678_v35 = vmul.f32 %v1757_v34, %v550_v37  ;;  %v899_v8 = vadd.f32 %v898_v44, %v868_v47  ;;  %v967_v9 = vadd.f32 %v966_v38, %v936_v48  ;;  %739 = vst [vmem:[%s1885_s7 + $0x40] sm:$0xff] %v707_v51  ;;  %v870_v58 = vsel %vm838_vm1, %v707_v51, 0.0 }
 0x165   : > { %vm643_vm11 = vcmp.ge.f32.partialorder %v542_v45, 0.0  ;;  %vm848_vm12 = vcmp.lt.s32.totalorder %v1834_v4, 1024  ;;  %v941_v57 = vmul.f32 %v872_v42, %v872_v42  ;;  %v676_v14 = vmul.f32 %v1757_v34, %v542_v45  ;;  %v1251_v16 = vpop.f32.mrb[12].mxu0  ;;  %v1993_v59 = vpop.f32.mrb[12].mxu1 }
 0x166   : > { %v710_v40 = vsel %vm645_vm9, %v550_v37, %v678_v35  ;;  %vm845_vm13 = vcmp.lt.s32.totalorder %v1827_v2, 1024  ;;  %vm653_vm14 = vcmp.ge.f32.partialorder %v1959_v18, 0.0  ;;  %v968_v47 = vadd.f32 %v967_v9, %v937_v20  ;;  %v554_v29 = vpop.f32.mrb[13].mxu0  ;;  %v1999_v22 = vpop.f32.mrb[13].mxu1 }
 0x167   : > { %v900_v38 = vadd.f32 %v899_v8, %v869_v24  ;;  %v939_v26 = vmul.f32 %v870_v58, %v870_v58  ;;  %742 = vst [vmem:[%s1885_s7 + $0x58] sm:$0xff] %v710_v40  ;;  %v563_v60 = vadd.f32 %v1251_v16, %v1817_v63  ;;  %vm843_vm15 = vcmp.lt.s32.totalorder %v1830_v3, 1024  ;;  %v1252_v24 = vpop.f32.mrb[14].mxu0  ;;  %v2007_v41 = vpop.f32.mrb[14].mxu1 }
 0x168   : > { %vm846_vm0 = vcmp.lt.s32.totalorder %v1837_v5, 1024  ;;  %v873_v23 = vsel %vm841_vm3, %v710_v40, 0.0  ;;  %v708_v37 = vsel %vm643_vm11, %v542_v45, %v676_v14  ;;  %v555_v20 = vadd.f32 %v1817_v63, %v554_v29  ;;  %v557_v49 = vpop.f32.mrb[15].mxu0  ;;  %v2013_v61 = vpop.f32.mrb[15].mxu1 }
 0x169   : > { %v686_v32 = vmul.f32 %v1757_v34, %v1959_v18  ;;  %v901_v43 = vadd.f32 %v900_v38, %v870_v58  ;;  %v969_v44 = vadd.f32 %v968_v47, %v938_v50  ;;  %740 = vst [vmem:[%s1885_s7 + $0x48] sm:$0xff] %v708_v37  ;;  %v871_v48 = vsel %vm839_vm5, %v708_v37, 0.0 }
 0x16a   : > { %vm648_vm1 = vcmp.ge.f32.partialorder %v563_v60, 0.0  ;;  %vm847_vm2 = vcmp.lt.s32.totalorder %v1843_v7, 1024  ;;  %v940_v45 = vmul.f32 %v871_v48, %v871_v48  ;;  %v681_v51 = vmul.f32 %v1757_v34, %v563_v60 }
 0x16b   : > { %vm646_vm3 = vcmp.ge.f32.partialorder %v555_v20, 0.0  ;;  %v679_v35 = vmul.f32 %v1757_v34, %v555_v20  ;;  %v970_v50 = vadd.f32 %v969_v44, %v939_v26  ;;  %v902_v8 = vadd.f32 %v901_v43, %v871_v48 }
 0x16c   : > { %v566_v62 = vadd.f32 %v1252_v24, %v1817_v63  ;;  %v558_v9 = vadd.f32 %v1817_v63, %v557_v49  ;;  %v713_v58 = vsel %vm648_vm1, %v563_v60, %v681_v51  ;;  %v2022_v14 = vsel %vm653_vm14, %v1959_v18, %v686_v32 }
 0x16d   : > { %v711_v40 = vsel %vm646_vm3, %v555_v20, %v679_v35  ;;  %v574_v16 = vadd.f32 %v1817_v63, %v1872_v31  ;;  %v942_v47 = vmul.f32 %v873_v23, %v873_v23  ;;  %v903_v38 = vadd.f32 %v902_v8, %v872_v42  ;;  %745 = vst [vmem:[%s1885_s7 + $0x70] sm:$0xff] %v713_v58 }
 0x16e   : > { %v971_v29 = vadd.f32 %v970_v50, %v940_v45  ;;  %743 = vst [vmem:[%s1885_s7 + $0x60] sm:$0xff] %v711_v40  ;;  %v874_v26 = vsel %vm842_vm8, %v711_v40, 0.0  ;;  %750 = vst [vmem:[%s1885_s7 + $0x98] sm:$0xff] %v2022_v14  ;;  %v876_v60 = vsel %vm844_vm10, %v713_v58, 0.0  ;;  %vm649_vm4 = vcmp.ge.f32.partialorder %v566_v62, 0.0 }
 0x16f   : > { %v943_v37 = vmul.f32 %v874_v26, %v874_v26  ;;  %v682_v18 = vmul.f32 %v1757_v34, %v566_v62  ;;  %vm849_vm5 = vcmp.lt.s32.totalorder %v1840_v6, 1024  ;;  %v904_v42 = vadd.f32 %v903_v38, %v873_v23 }
 0x170   : > { %v972_v31 = vadd.f32 %v971_v29, %v941_v57  ;;  %vm647_vm6 = vcmp.ge.f32.partialorder %v558_v9, 0.0  ;;  %v680_v20 = vmul.f32 %v1757_v34, %v558_v9  ;;  %v2040_v24 = vsel %vm848_vm12, %v1896_v52, 0.0 }
 0x171   : > { %v714_v1 = vsel %vm649_vm4, %v566_v62, %v682_v18  ;;  %vm651_vm7 = vcmp.ge.f32.partialorder %v574_v16, 0.0  ;;  %v684_v0 = vmul.f32 %v1757_v34, %v574_v16  ;;  %vm850_vm8 = vcmp.lt.s32.totalorder %v1850_v11, 1024 }
 0x172   : > { %v905_v32 = vadd.f32 %v904_v42, %v874_v26  ;;  %v973_v43 = vadd.f32 %v972_v31, %v942_v47  ;;  %746 = vst [vmem:[%s1885_s7 + $0x78] sm:$0xff] %v714_v1  ;;  %v877_v57 = vsel %vm845_vm13, %v714_v1, 0.0  ;;  %v712_v23 = vsel %vm647_vm6, %v558_v9, %v680_v20 }
 0x173   : > { %vm852_vm9 = vcmp.lt.s32.totalorder %v1847_v10, 1024  ;;  %v945_v44 = vmul.f32 %v876_v60, %v876_v60  ;;  %744 = vst [vmem:[%s1885_s7 + $0x68] sm:$0xff] %v712_v23  ;;  %v875_v4 = vsel %vm843_vm15, %v712_v23, 0.0  ;;  %v878_v52 = vsel %vm846_vm0, %v1955_v17, 0.0 }
 0x174   : > { %v716_v48 = vsel %vm651_vm7, %v574_v16, %v684_v0  ;;  %v974_v49 = vadd.f32 %v973_v43, %v943_v37  ;;  %v946_v45 = vmul.f32 %v877_v57, %v877_v57  ;;  %v906_v51 = vadd.f32 %v905_v32, %v875_v4 }
 0x175   : > { %v944_v35 = vmul.f32 %v875_v4, %v875_v4  ;;  %748 = vst [vmem:[%s1885_s7 + $0x88] sm:$0xff] %v716_v48  ;;  %v879_v2 = vsel %vm847_vm2, %v716_v48, 0.0  ;;  %v595_v50 = vadd.f32 %v1905_v55, %v1817_v63  ;;  %v587_v3 = vadd.f32 %v1817_v63, %v1918_v15 }
 0x176   : > { %v598_v8 = vadd.f32 %v1923_v21, %v1817_v63  ;;  %vm851_vm10 = vcmp.lt.s32.totalorder %v1856_v13, 1024  ;;  %v907_v5 = vadd.f32 %v906_v51, %v876_v60  ;;  %v590_v62 = vadd.f32 %v1817_v63, %v1930_v28 }
 0x177   : > { %v975_v17 = vadd.f32 %v974_v49, %v944_v35  ;;  %v611_v7 = vadd.f32 %v1948_v39, %v1817_v63  ;;  %vm656_vm11 = vcmp.ge.f32.partialorder %v595_v50, 0.0  ;;  %v689_v9 = vmul.f32 %v1757_v34, %v595_v50 }
 0x178   : > { %vm654_vm12 = vcmp.ge.f32.partialorder %v587_v3, 0.0  ;;  %v687_v55 = vmul.f32 %v1757_v34, %v587_v3  ;;  %v908_v21 = vadd.f32 %v907_v5, %v877_v57  ;;  %vm657_vm13 = vcmp.ge.f32.partialorder %v598_v8, 0.0 }
 0x179   : > { %v976_v15 = vadd.f32 %v975_v17, %v945_v44  ;;  %v690_v58 = vmul.f32 %v1757_v34, %v598_v8  ;;  %v721_v40 = vsel %vm656_vm11, %v595_v50, %v689_v9  ;;  %vm853_vm14 = vcmp.lt.s32.totalorder %v1853_v12, 1024 }
 0x17a   : > { %v719_v16 = vsel %vm654_vm12, %v587_v3, %v687_v55  ;;  %vm655_vm15 = vcmp.ge.f32.partialorder %v590_v62, 0.0  ;;  %v688_v28 = vmul.f32 %v1757_v34, %v590_v62  ;;  %v909_v39 = vadd.f32 %v908_v21, %v878_v52  ;;  %753 = vst [vmem:[%s1885_s7 + $0xb0] sm:$0xff] %v721_v40 }
 0x17b   : > { %v947_v47 = vmul.f32 %v878_v52, %v878_v52  ;;  %v977_v38 = vadd.f32 %v976_v15, %v946_v45  ;;  %v881_v29 = vsel %vm849_vm5, %v2022_v14, 0.0  ;;  %751 = vst [vmem:[%s1885_s7 + $0xa0] sm:$0xff] %v719_v16  ;;  %v949_v26 = vmul.f32 %v2040_v24, %v2040_v24 }
 0x17c   : > { %v722_v60 = vsel %vm657_vm13, %v598_v8, %v690_v58  ;;  %v720_v37 = vsel %vm655_vm15, %v590_v62, %v688_v28  ;;  %v793_v18 = vadd.s32 224, %v1745_v25  ;;  %v910_v42 = vadd.f32 %v909_v39, %v879_v2 }
 0x17d   : > { %v978_v31 = vadd.f32 %v977_v38, %v947_v47  ;;  %v948_v20 = vmul.f32 %v879_v2, %v879_v2  ;;  %v882_v1 = vsel %vm850_vm8, %v719_v16, 0.0  ;;  %754 = vst [vmem:[%s1885_s7 + $0xb8] sm:$0xff] %v722_v60  ;;  %752 = vst [vmem:[%s1885_s7 + $0xa8] sm:$0xff] %v720_v37  ;;  %vm854_vm0 = vcmp.lt.s32.totalorder %v1899_v53, 1024 }
 0x17e   : > { %v950_v6 = vmul.f32 %v881_v29, %v881_v29  ;;  %v884_v14 = vsel %vm852_vm9, %v721_v40, 0.0  ;;  %vm660_vm1 = vcmp.ge.f32.partialorder %v611_v7, 0.0  ;;  %v693_v0 = vmul.f32 %v1757_v34, %v611_v7 }
 0x17f   : > { %v911_v32 = vadd.f32 %v910_v42, %v2040_v24  ;;  %v979_v43 = vadd.f32 %v978_v31, %v948_v20  ;;  %v603_v57 = vadd.f32 %v1817_v63, %v1961_v19  ;;  %v614_v11 = vadd.f32 %v1968_v30, %v1817_v63 }
 0x180   : > { %vm855_vm2 = vcmp.lt.s32.totalorder %v1911_v56, 1024  ;;  %v951_v23 = vmul.f32 %v882_v1, %v882_v1  ;;  %v725_v44 = vsel %vm660_vm1, %v611_v7, %v693_v0  ;;  %v606_v10 = vadd.f32 %v1817_v63, %v1973_v33 }
 0x181   : > { %v627_v4 = vadd.f32 %v1993_v59, %v1817_v63  ;;  %v980_v52 = vadd.f32 %v979_v43, %v949_v26  ;;  %v912_v48 = vadd.f32 %v911_v32, %v881_v29  ;;  %v883_v24 = vsel %vm851_vm10, %v720_v37, 0.0  ;;  %757 = vst [vmem:[%s1885_s7 + $0xd0] sm:$0xff] %v725_v44 }
 0x182   : > { %vm856_vm3 = vcmp.lt.s32.totalorder %v1881_v46, 1024  ;;  %vm658_vm4 = vcmp.ge.f32.partialorder %v603_v57, 0.0  ;;  %v691_v19 = vmul.f32 %v1757_v34, %v603_v57  ;;  %vm661_vm5 = vcmp.ge.f32.partialorder %v614_v11, 0.0 }
 0x183   : > { %v694_v30 = vmul.f32 %v1757_v34, %v614_v11  ;;  %v619_v33 = vadd.f32 %v1817_v63, %v1999_v22  ;;  %v913_v59 = vadd.f32 %v912_v48, %v882_v1  ;;  %v981_v49 = vadd.f32 %v980_v52, %v950_v6 }
 0x184   : > { %vm857_vm6 = vcmp.lt.s32.totalorder %v1908_v36, 1024  ;;  %vm659_vm7 = vcmp.ge.f32.partialorder %v606_v10, 0.0  ;;  %v692_v13 = vmul.f32 %v1757_v34, %v606_v10  ;;  %v723_v45 = vsel %vm658_vm4, %v603_v57, %v691_v19 }
 0x185   : > { %v726_v51 = vsel %vm661_vm5, %v614_v11, %v694_v30  ;;  %vm664_vm8 = vcmp.ge.f32.partialorder %v627_v4, 0.0  ;;  %v697_v35 = vmul.f32 %v1757_v34, %v627_v4  ;;  %v982_v2 = vadd.f32 %v981_v49, %v951_v23  ;;  %755 = vst [vmem:[%s1885_s7 + $0xc0] sm:$0xff] %v723_v45 }
 0x186   : > { %v885_v50 = vsel %vm853_vm14, %v722_v60, 0.0  ;;  %v914_v3 = vadd.f32 %v913_v59, %v883_v24  ;;  %v952_v22 = vmul.f32 %v883_v24, %v883_v24  ;;  %758 = vst [vmem:[%s1885_s7 + $0xd8] sm:$0xff] %v726_v51  ;;  %v724_v8 = vsel %vm659_vm7, %v606_v10, %v692_v13 }
 0x187   : > { %v2114_v5 = vsel %vm664_vm8, %v627_v4, %v697_v35  ;;  %v796_v17 = vadd.s32 248, %v1745_v25  ;;  %v794_v62 = vadd.s32 232, %v1745_v25  ;;  %v953_v7 = vmul.f32 %v884_v14, %v884_v14  ;;  %756 = vst [vmem:[%s1885_s7 + $0xc8] sm:$0xff] %v724_v8 }
 0x188   : > { %v915_v9 = vadd.f32 %v914_v3, %v884_v14  ;;  %v983_v55 = vadd.f32 %v982_v2, %v952_v22  ;;  %761 = vst [vmem:[%s1885_s7 + $0xf0] sm:$0xff] %v2114_v5  ;;  %v826_v12 = vadd.s32 %v1749_v27, %v793_v18  ;;  %v954_v15 = vmul.f32 %v885_v50, %v885_v50 }
 0x189   : > { %v886_v21 = vsel %vm854_vm0, %v723_v45, 0.0  ;;  %vm662_vm9 = vcmp.ge.f32.partialorder %v619_v33, 0.0  ;;  %v695_v58 = vmul.f32 %v1757_v34, %v619_v33  ;;  %v630_v25 = vadd.f32 %v2007_v41, %v1817_v63 }
 0x18a   : > { %v984_v40 = vadd.f32 %v983_v55, %v953_v7  ;;  %v916_v16 = vadd.f32 %v915_v9, %v885_v50  ;;  %v622_v28 = vadd.f32 %v1817_v63, %v2013_v61  ;;  %v887_v39 = vsel %vm855_vm2, %v724_v8, 0.0 }
 0x18b   : > { %v2135_v53 = vadd.s32 %v1749_v27, %v1944_v54  ;;  %v727_v47 = vsel %vm662_vm9, %v619_v33, %v695_v58  ;;  %v827_v38 = vadd.s32 %v1749_v27, %v794_v62  ;;  %v955_v26 = vmul.f32 %v886_v21, %v886_v21 }
 0x18c   : > { %v917_v29 = vadd.f32 %v916_v16, %v886_v21  ;;  %v985_v60 = vadd.f32 %v984_v40, %v954_v15  ;;  %759 = vst [vmem:[%s1885_s7 + $0xe0] sm:$0xff] %v727_v47  ;;  %vm665_vm10 = vcmp.ge.f32.partialorder %v630_v25, 0.0  ;;  %v888_v63 = vsel %vm856_vm3, %v725_v44, 0.0 }
 0x18d   : > { %v698_v41 = vmul.f32 %v1757_v34, %v630_v25  ;;  %vm663_vm11 = vcmp.ge.f32.partialorder %v622_v28, 0.0  ;;  %v696_v56 = vmul.f32 %v1757_v34, %v622_v28  ;;  %v956_v46 = vmul.f32 %v887_v39, %v887_v39 }
 0x18e   : > { %v986_v54 = vadd.f32 %v985_v60, %v955_v26  ;;  %v918_v61 = vadd.f32 %v917_v29, %v887_v39  ;;  %vm858_vm12 = vcmp.lt.s32.totalorder %v826_v12, 1024  ;;  %v889_v37 = vsel %vm857_vm6, %v726_v51, 0.0 }
 0x18f   : > { %v730_v18 = vsel %vm665_vm10, %v630_v25, %v698_v41  ;;  %v829_v34 = vadd.s32 %v1749_v27, %v796_v17  ;;  %v728_v31 = vsel %vm663_vm11, %v622_v28, %v696_v56  ;;  %v957_v42 = vmul.f32 %v888_v63, %v888_v63 }
 0x190   : > { %v919_v20 = vadd.f32 %v918_v61, %v888_v63  ;;  %v987_v1 = vadd.f32 %v986_v54, %v956_v46  ;;  %762 = vst [vmem:[%s1885_s7 + $0xf8] sm:$0xff] %v730_v18  ;;  %760 = vst [vmem:[%s1885_s7 + $0xe8] sm:$0xff] %v728_v31  ;;  %vm859_vm13 = vcmp.lt.s32.totalorder %v827_v38, 1024  ;;  %v890_v6 = vsel %vm858_vm12, %v727_v47, 0.0 }
 0x191   : > { %1446 = shalt.err (!%p1443_p7)
}
 0x192   : > { %s1447_s25 = scalar_lea.hbm %s2146_s13, 4096  ;;  %s1451_s18 = scalar_lea.hbm %s2234_s4, 16384 }
 0x193   : > { %p1448_p9 = scmp.ne.s32.totalorder %s2146_s13, %s1447_s25  ;;  %p1452_p5 = scmp.lt.u32.totalorder %s2146_s13, %s2234_s4 }
 0x194   : > { %p1453_p10 = scmp.lt.u32.totalorder %s1451_s18, %s1447_s25  ;;  %p1455_p4 = scmp.lt.u32.totalorder %s1447_s25, %s2146_s13 }
 0x195   : > { %p1449_p1 = pnand %p1448_p9, %p1664_p12 }
 0x196   : > { %p1454_p2 = por %p1453_p10, %p1452_p5 }
 0x197   : > { %p1450_p0 = pneg %p1449_p1 }
 0x198   : > { %p1456_p6 = por %p1455_p4, %p1454_p2 }
 0x19a   : > { %p1457_p8 = pnand %p1456_p6, %p1450_p0 }
 0x19c   : > { %1460 = shalt.err (!%p1457_p8)
}
 0x19d   : > { %s1542_s8 = smov 128   ;;  %s1543_s12 = smov 8   ;;  %v958_v27 = vmul.f32 %v889_v37, %v889_v37  ;;  %v988_v36 = vadd.f32 %v987_v1, %v957_v42  ;;  %vm860_vm14 = vcmp.lt.s32.totalorder %v2135_v53, 1024  ;;  %v920_v14 = vadd.f32 %v919_v20, %v889_v37 }
 0x19e   : > { %1291 = dma.vmem_to_hbm [thread:$0]  (%p1664_p12), %s2148_s15, 4096, %s2146_s13, %s1004_s29, %s1542_s8, %s1542_s8, %s1543_s12   ;;  %v891_v0 = vsel %vm859_vm13, %v728_v31, 0.0  ;;  %v959_v43 = vmul.f32 %v890_v6, %v890_v6  ;;  %vm861_vm15 = vcmp.lt.s32.totalorder %v829_v34, 1024  ;;  %v892_v11 = vsel %vm860_vm14, %v2114_v5, 0.0 }
 0x19f   : > { %v921_v32 = vadd.f32 %v920_v14, %v890_v6  ;;  %v989_v57 = vadd.f32 %v988_v36, %v958_v27  ;;  %v960_v10 = vmul.f32 %v891_v0, %v891_v0  ;;  %v893_v4 = vsel %vm861_vm15, %v730_v18, 0.0  ;;  %s1161_s15 = sshll.u32 %s1715_s16, 1  ;;  %s1192_s30 = sshll.u32 %s1599_s3, 5 }
 0x1a0   : > { %v961_v52 = vmul.f32 %v892_v11, %v892_v11  ;;  %v962_v19 = vmul.f32 %v893_v4, %v893_v4  ;;  %s269_s13 = scalar_lea.vmem [#allocation9], %s1161_s15  ;;  %vm1000_vm0 = vcmask 1040384   ;;  %s2187_s10 = scalar_lea.hbm %s2235_s5, %s1192_s30 }
 0x1a1   : > { %v990_v23 = vadd.f32 %v989_v57, %v959_v43  ;;  %v922_v44 = vadd.f32 %v921_v32, %v891_v0  ;;  %s1038_s29 = sshll.u32 %s269_s13, 4  ;;  %s1009_s11 = scalar_lea.sflag [#allocation10], %s1715_s16  ;;  %s2189_s29 = int_to_ptr.vmem [resolvable:$true] %s1038_s29 }
 0x1a2   : > { %s1461_s25 = scalar_lea.vmem %s2189_s29, 32  ;;  %s1544_s3 = smov [#allocation9]  }
 0x1a3   : > { %v923_v48 = vadd.f32 %v922_v44, %v892_v11  ;;  %v991_v24 = vadd.f32 %v990_v23, %v960_v10  ;;  %p1462_p11 = scmp.ne.s32.totalorder %s2189_s29, %s1461_s25  ;;  %s1465_s27 = sshll.u32 %s1544_s3, 4  ;;  %s1466_s27 = int_to_ptr.vmem [resolvable:$false] %s1465_s27 }
 0x1a4   : > { %s1467_s17 = scalar_lea.vmem %s1466_s27, 64  ;;  %p1468_p7 = scmp.lt.s32.totalorder %s2189_s29, %s1466_s27 }
 0x1a5   : > { %v924_v30 = vadd.f32 %v923_v48, %v893_v4  ;;  %v992_v33 = vadd.f32 %v991_v24, %v961_v52  ;;  %p1463_p13 = pnand %p1462_p11, %p1664_p12  ;;  %p1469_p9 = scmp.lt.s32.totalorder %s1467_s17, %s1461_s25 }
 0x1a7   : > { %v925_v59 = vrot.slane %v924_v30, 4  ;;  %v993_v49 = vadd.f32 %v992_v33, %v962_v19  ;;  %p1464_p3 = pneg %p1463_p13  ;;  %p1470_p1 = por %p1469_p9, %p1468_p7 }
 0x1a9   : > { %v926_v13 = vadd.f32 %v925_v59, %v924_v30  ;;  %v994_v45 = vrot.slane %v993_v49, 4  ;;  %p1471_p0 = pnand %p1470_p1, %p1464_p3 }
 0x1ab   : > { %v927_v51 = vrot.slane %v926_v13, 2  ;;  %v995_v35 = vadd.f32 %v994_v45, %v993_v49 }
 0x1ad   : > { %v928_v2 = vadd.f32 %v927_v51, %v926_v13  ;;  %v996_v50 = vrot.slane %v995_v35, 2 }
 0x1af   : > { %v929_v3 = vrot.slane %v928_v2, 1  ;;  %v997_v22 = vadd.f32 %v996_v50, %v995_v35 }
 0x1b1   : > { %v998_v8 = vrot.slane %v997_v22, 1  ;;  %v930_v5 = vadd.f32 %v929_v3, %v928_v2 }
 0x1b3   : > { %v999_v17 = vadd.f32 %v998_v8, %v997_v22 }
 0x1b5   : > { %v1001_v62 = vsel %vm1000_vm0, %v930_v5, %v999_v17 }
 0x1b6   : > { %1002 = vst [vmem:[%s269_s13] sm:$0x3] %v1001_v62 }
 0x1b7   : > { %1474 = shalt.err (!%p1471_p0)
}
 0x1b8   : > { %s1475_s16 = scalar_lea.hbm %s2187_s10, 32  ;;  %s1479_s7 = scalar_lea.hbm %s2235_s5, 128 }
 0x1b9   : > { %p1476_p5 = scmp.ne.s32.totalorder %s2187_s10, %s1475_s16  ;;  %p1480_p4 = scmp.lt.u32.totalorder %s2187_s10, %s2235_s5 }
 0x1ba   : > { %p1481_p6 = scmp.lt.u32.totalorder %s1479_s7, %s1475_s16  ;;  %p1483_p11 = scmp.lt.u32.totalorder %s1475_s16, %s2187_s10 }
 0x1bb   : > { %p1477_p10 = pnand %p1476_p5, %p1664_p12 }
 0x1bc   : > { %p1482_p8 = por %p1481_p6, %p1480_p4 }
 0x1bd   : > { %p1478_p2 = pneg %p1477_p10 }
 0x1be   : > { %p1484_p13 = por %p1483_p11, %p1482_p8 }
 0x1c0   : > { %p1485_p3 = pnand %p1484_p13, %p1478_p2 }
 0x1c2   : > { %1488 = shalt.err (!%p1485_p3)
}
 0x1c3   : > { %1292 = dma.vmem_to_hbm [thread:$0]  (%p1664_p12), %s2189_s29, 32, %s2187_s10, %s1009_s11  }
 0x1c4 PF: > { %p1313_p7 = scmp.ge.s32.totalorder %s1535_s23, 2  ;;  %s1050_s15 = sand.u32 1, %s1523_s20  }
 0x1c5   : > { %p2250_p9 = scmp.ne.s32.totalorder %s2240_s26, 0  ;;  %s1051_s30 = scalar_lea.sflag [#allocation5], %s1050_s15 }
 0x1c7   : > { %p1304_p1 = pnand %p1313_p7, %p2250_p9 }
 0x1c9   : > { %1514 = dma.done.wait (!%p1304_p1), %s1051_s30, 4096  }
 0x1ca   : > { %1516 = vsyncadd (!%p1304_p1), %s1051_s30, 4294963200  ;;  %s1060_s13 = scalar_lea.sflag [#allocation10], %s1050_s15 }
 0x1cb   : > { %1518 = dma.done.wait (!%p1304_p1), %s1060_s13, 32  }
 0x1cc   : > { %1520 = vsyncadd (!%p1304_p1), %s1060_s13, 4294967264  ;;  %p24_p12 = scmp.ge.s32.totalorder %s1631_s6, 6   ;;  %s2251_s20 = smov %s1527_s21 }
 0x1cd   : > { %s2252_s21 = smov %s1531_s22  ;;  %s2253_s22 = smov %s1660_s28 }
 0x1ce   : > { %s2254_s23 = smov %s1631_s6  ;;  %26 = sbr.rel (!%p24_p12) target bundleno = 10 (0xa), region = 102 }
 0x1d5   :  { %1065 = vsyncpa [#allocation4], 1 }
 0x1d6   :  { %1067 = vsyncpa [#allocation4 + $0x1], 1 }
 0x1d7   :  { %1068 = vsyncpa [#allocation7], 1 }
 0x1d8   :  { %1069 = vsyncpa [#allocation5], 1 }
 0x1d9   :  { %1071 = vsyncpa [#allocation5 + $0x1], 1 }
 0x1da   :  { %1072 = vsyncpa [#allocation10], 1 }
 0x1db   :  { %1074 = vsyncpa [#allocation10 + $0x1], 1 }

</bundles_post_ra>
